<compile_context>
chip_gen: v5e
topology: v5e:2x2
jax: 0.10.0
libtpu: 0.0.40
codegen_flags: <defaults>
</compile_context>

<pallas_src>
import functools
import operator
from functools import reduce

import numpy as np
import jax
import jax.numpy as jnp
from jax import lax
from jax.experimental import pallas as pl
from jax.experimental.pallas import tpu as pltpu


def _round_up(x, m):
    return ((x + m - 1) // m) * m


def _pick_tile_k(K, max_unblocked=2048):
    """Whole K when it fits comfortably in VMEM; otherwise the largest
    128-aligned divisor so the K reduction never reads OOB rows."""
    if K <= max_unblocked:
        return K
    for d in (2048, 1024, 512, 256, 128):
        if K % d == 0:
            return d
    return K  # fallback: unblocked; explicit vmem_limit_bytes still set


# ----------------------------- Pallas kernels --------------------------------
def _linear_kernel(x_ref, w_ref, b_ref, o_ref, *, compute_dtype):
    # Single K block: x (tile_m, K) @ w (K, tile_c) + b (1, tile_c).
    x = x_ref[...]
    if compute_dtype is not None:
        x = x.astype(compute_dtype)          # VPU cast, hidden under MXU work
    acc = jnp.dot(x, w_ref[...], preferred_element_type=jnp.float32)
    o_ref[...] = (acc + b_ref[...]).astype(o_ref.dtype)


def _linear_kernel_kblocked(x_ref, w_ref, b_ref, o_ref, acc_ref, *,
                            compute_dtype, k_axis):
    # K-blocked variant with an f32 VMEM accumulator (VMEM guard for large K).
    k = pl.program_id(k_axis)

    @pl.when(k == 0)
    def _():
        acc_ref[...] = jnp.zeros_like(acc_ref)

    x = x_ref[...]
    if compute_dtype is not None:
        x = x.astype(compute_dtype)
    acc_ref[...] += jnp.dot(x, w_ref[...], preferred_element_type=jnp.float32)

    @pl.when(k == pl.num_programs(k_axis) - 1)
    def _():
        o_ref[...] = (acc_ref[...] + b_ref[...]).astype(o_ref.dtype)


# ------------------------------ Linear wrapper -------------------------------
def pallas_linear(x2d, w_pad, b_pad, c_out, *, tile_m=512, tile_c=256,
                  tile_k=None, compute_dtype=jnp.bfloat16, out_dtype=None):
    """(M, K) @ (K, C_pad) + (1, C_pad) -> (M, c_out) on the MXU.

    w_pad / b_pad are prepared once at init (lane-dense C_pad columns, bf16
    weight, f32 (1, C_pad) bias). x2d stays in its original dtype in HBM and is
    cast inside the kernel. Output is written at (M, c_out) directly; the last
    C tile and last M tile rely on Pallas OOB write masking (no trim pass).
    """
    M, K = x2d.shape
    Kw, C_pad = w_pad.shape
    assert Kw == K and b_pad.shape == (1, C_pad)
    out_dtype = out_dtype if out_dtype is not None else x2d.dtype

    tile_m = min(tile_m, _round_up(M, 8))
    tile_c = min(tile_c, C_pad)
    assert C_pad % tile_c == 0
    if tile_k is None:
        tile_k = _pick_tile_k(K)
    tile_k = min(tile_k, K)
    if K % tile_k != 0:
        tile_k = K                      # never let the K reduction read OOB

    grid_m = pl.cdiv(M, tile_m)
    grid_c = C_pad // tile_c
    grid_k = K // tile_k

    # Explicit VMEM budget (double-buffered inputs/outputs + accumulator).
    x_b = x2d.dtype.itemsize
    w_b = w_pad.dtype.itemsize
    o_b = np.dtype(out_dtype).itemsize
    est = (2 * (tile_m * tile_k * x_b + tile_k * tile_c * w_b + tile_c * 4)
           + 2 * tile_m * tile_c * o_b)
    if grid_k > 1:
        est += tile_m * tile_c * 4
    vmem_limit = int(min(64 << 20, max(32 << 20, 2 * est)))

    # Grid layout:
    #   grid_c > 1 : (C, M[, K])  -- weight tile resident across the inner M sweep.
    #   grid_c == 1: (M[, K])     -- only one weight tile anyway; M first so
    #                                megacore (v7x, 2 TCs) can shard the M sweep.
    if grid_c == 1:
        if grid_k == 1:
            grid = (grid_m,)
            semantics = ("parallel",)
            x_map = lambda i: (i, 0)
            w_map = lambda i: (0, 0)
            b_map = lambda i: (0, 0)
            o_map = lambda i: (i, 0)
            kernel = functools.partial(_linear_kernel, compute_dtype=compute_dtype)
            scratch = []
        else:
            grid = (grid_m, grid_k)
            semantics = ("parallel", "arbitrary")
            x_map = lambda i, k: (i, k)
            w_map = lambda i, k: (k, 0)
            b_map = lambda i, k: (0, 0)
            o_map = lambda i, k: (i, 0)
            kernel = functools.partial(_linear_kernel_kblocked,
                                       compute_dtype=compute_dtype, k_axis=1)
            scratch = [pltpu.VMEM((tile_m, tile_c), jnp.float32)]
    else:
        if grid_k == 1:
            grid = (grid_c, grid_m)
            semantics = ("parallel", "parallel")
            x_map = lambda j, i: (i, 0)
            w_map = lambda j, i: (0, j)
            b_map = lambda j, i: (0, j)
            o_map = lambda j, i: (i, j)
            kernel = functools.partial(_linear_kernel, compute_dtype=compute_dtype)
            scratch = []
        else:
            grid = (grid_c, grid_m, grid_k)
            semantics = ("parallel", "parallel", "arbitrary")
            x_map = lambda j, i, k: (i, k)
            w_map = lambda j, i, k: (k, j)
            b_map = lambda j, i, k: (0, j)
            o_map = lambda j, i, k: (i, j)
            kernel = functools.partial(_linear_kernel_kblocked,
                                       compute_dtype=compute_dtype, k_axis=2)
            scratch = [pltpu.VMEM((tile_m, tile_c), jnp.float32)]

    return pl.pallas_call(
        kernel,
        out_shape=jax.ShapeDtypeStruct((M, c_out), out_dtype),
        grid=grid,
        in_specs=[
            pl.BlockSpec((tile_m, tile_k), x_map),
            pl.BlockSpec((tile_k, tile_c), w_map),
            pl.BlockSpec((1, tile_c), b_map),
        ],
        out_specs=pl.BlockSpec((tile_m, tile_c), o_map),
        scratch_shapes=scratch,
        compiler_params=pltpu.CompilerParams(
            dimension_semantics=semantics,
            vmem_limit_bytes=vmem_limit),
    )(x2d, w_pad, b_pad)


# ------------------------------- Fold (glue) ---------------------------------
def fold(feat_bnc, channel, output_size, kernel_size, stride, padding):
    """Equivalent of torch.nn.Fold applied to feat.permute(0, 2, 1).

    feat_bnc: (B, L, channel * kh * kw), channel-major then (kh, kw) row-major,
    with L enumerating blocks row-major over the (padded) output plane.
    Returns (B, channel, H, W)."""
    B, L, c_out = feat_bnc.shape
    H, W = output_size
    kh, kw = kernel_size
    sh, sw = stride
    ph, pw = padding
    Lh = (H + 2 * ph - kh) // sh + 1
    Lw = (W + 2 * pw - kw) // sw + 1
    assert L == Lh * Lw and c_out == channel * kh * kw

    f = feat_bnc.reshape(B, Lh, Lw, channel, kh, kw)

    # Fast path: non-overlapping blocks exactly tiling the output plane ->
    # the fold is a pure reshape + transpose (single pass, no accumulation).
    # TODO(synk): fuse this transpose into the matmul kernel epilogue (write
    # NCHW directly from VMEM) when Lw*kw >= 128; below that the lane dim is
    # too narrow to be worth a custom out index_map.
    if ((sh, sw) == (kh, kw) and (ph, pw) == (0, 0)
            and Lh * kh == H and Lw * kw == W):
        return jnp.transpose(f, (0, 3, 1, 4, 2, 5)).reshape(B, channel, H, W)

    # General overlap-add path (plain JAX glue).
    Hp, Wp = H + 2 * ph, W + 2 * pw
    placed = []
    for i in range(kh):
        for j in range(kw):
            vals = jnp.transpose(f[:, :, :, :, i, j], (0, 3, 1, 2))  # (B,C,Lh,Lw)
            hi_h = Hp - (i + (Lh - 1) * sh + 1)
            hi_w = Wp - (j + (Lw - 1) * sw + 1)
            placed.append(lax.pad(
                vals, jnp.array(0, vals.dtype),
                ((0, 0, 0), (0, 0, 0), (i, hi_h, sh - 1), (j, hi_w, sw - 1))))
    out = functools.reduce(operator.add, placed)
    return out[:, :, ph:ph + H, pw:pw + W]


# ------------------------------ Forward (jitted) -----------------------------
def _vec2patch_forward(x, w_pad, b_pad, *, c_out, channel, output_size,
                       kernel_size, stride, padding, tile_m, tile_c, tile_k,
                       compute_dtype):
    B, N, hidden = x.shape
    feat2d = pallas_linear(x.reshape(B * N, hidden), w_pad, b_pad, c_out,
                           tile_m=tile_m, tile_c=tile_c, tile_k=tile_k,
                           compute_dtype=compute_dtype)
    feat = feat2d.reshape(B, N, c_out)
    # permute(0, 2, 1) + torch.nn.Fold, expressed directly on (B, N, c_out)
    return fold(feat, channel, output_size, kernel_size, stride, padding)


# --------------------------------- Module ------------------------------------
class Vec2Patch:
    """JAX/Pallas port of the PyTorch Vec2Patch module.

    Note: the PyTorch module defines self.relu (LeakyReLU) but never uses it
    in forward(), so it is intentionally omitted here."""

    def __init__(self, channel, hidden, output_size, kernel_size, stride,
                 padding, key, compute_dtype=jnp.bfloat16,
                 tile_m=512, tile_c=256, tile_k=None):
        self.channel = channel
        self.hidden = hidden
        self.output_size = tuple(output_size)
        self.kernel_size = tuple(kernel_size)
        self.stride = tuple(stride)
        self.padding = tuple(padding)
        self.compute_dtype = compute_dtype

        c_out = reduce(lambda a, b: a * b, kernel_size) * channel
        self.c_out = c_out

        kw_, kb_ = jax.random.split(key)
        bound = 1.0 / (hidden ** 0.5)  # matches nn.Linear default init scale
        # stored already transposed: (hidden, c_out)
        self.weight = jax.random.uniform(
            kw_, (hidden, c_out), jnp.float32, -bound, bound)
        self.bias = jax.random.uniform(
            kb_, (c_out,), jnp.float32, -bound, bound)

        # One-time kernel-side parameter prep (hoisted out of the hot path):
        # lane-dense C_pad columns, weight cast to compute dtype, bias kept f32.
        self.tile_c = min(tile_c, _round_up(c_out, 128))
        c_pad = _round_up(c_out, self.tile_c)
        w = self.weight
        b = self.bias
        if c_pad != c_out:
            w = jnp.pad(w, ((0, 0), (0, c_pad - c_out)))
            b = jnp.pad(b, ((0, c_pad - c_out),))
        if compute_dtype is not None:
            w = w.astype(compute_dtype)
        self.w_prepped = w
        self.b_prepped = b.astype(jnp.float32).reshape(1, c_pad)

        self.tile_m = tile_m
        self.tile_k = tile_k if tile_k is not None else _pick_tile_k(hidden)

        self._forward = jax.jit(functools.partial(
            _vec2patch_forward,
            c_out=c_out, channel=channel, output_size=self.output_size,
            kernel_size=self.kernel_size, stride=self.stride,
            padding=self.padding, tile_m=self.tile_m, tile_c=self.tile_c,
            tile_k=self.tile_k, compute_dtype=compute_dtype))

    def __call__(self, x):
        return self._forward(x, self.w_prepped, self.b_prepped)


# --------------------------------- Main ---------------------------------------
if __name__ == "__main__":
    key = jax.random.PRNGKey(0)
    k_param, k_x = jax.random.split(key)

    # Small, consistent configuration.
    channel = 4
    hidden = 32
    output_size = (16, 16)
    kernel_size = (4, 4)
    stride = (4, 4)
    padding = (0, 0)
    B = 2
    Lh = (output_size[0] + 2 * padding[0] - kernel_size[0]) // stride[0] + 1
    Lw = (output_size[1] + 2 * padding[1] - kernel_size[1]) // stride[1] + 1
    N = Lh * Lw  # 16 tokens

    module = Vec2Patch(channel, hidden, output_size, kernel_size, stride,
                       padding, k_param)
    x = jax.random.normal(k_x, (B, N, hidden), jnp.float32)

    out = module(x)
    out = jax.block_until_ready(out)

    # Reference 1: same precision as the kernel (bf16 inputs, f32 accumulate).
    x2d = x.reshape(B * N, hidden)
    feat_bf = (jnp.dot(x2d.astype(jnp.bfloat16),
                       module.weight.astype(jnp.bfloat16),
                       preferred_element_type=jnp.float32)
               + module.bias).astype(jnp.float32)
    ref_bf = fold(feat_bf.reshape(B, N, module.c_out), channel, output_size,
                  kernel_size, stride, padding)
    # Reference 2: full fp32 math (loose sanity check on the bf16 compute path).
    feat_f32 = x2d @ module.weight + module.bias
    ref_f32 = fold(feat_f32.reshape(B, N, module.c_out), channel, output_size,
                   kernel_size, stride, padding)

    assert out.shape == (B, channel, output_size[0], output_size[1])
    assert out.dtype == jnp.float32
    assert jnp.allclose(out, ref_bf, rtol=1e-3, atol=1e-3)
    assert jnp.allclose(out, ref_f32, rtol=5e-2, atol=5e-2)

    print("KERNEL_OK")
</pallas_src>

<mosaic_0001>
module attributes {stable_mosaic.version = 11 : i64} {
  func.func @_linear_kernel(%arg0: i32, %arg1: memref<32x32xf32, #tpu.memory_space<vmem>>, %arg2: memref<32x128xbf16, #tpu.memory_space<vmem>>, %arg3: memref<1x128xf32, #tpu.memory_space<vmem>>, %arg4: memref<32x128xf32, #tpu.memory_space<vmem>>) attributes {dimension_semantics = [#tpu.dimension_semantics<parallel>], iteration_bounds = array<i64: 1>, scalar_prefetch = 0 : i64, scratch_operands = 0 : i64, tpu.core_type = #tpu.core_type<tc>, window_params = [{transform_indices = @transform_0, window_bounds = array<i64: 32, 32>}, {pipeline_mode = #tpu.pipeline_mode<synchronous>, transform_indices = @transform_1, window_bounds = array<i64: 32, 128>}, {pipeline_mode = #tpu.pipeline_mode<synchronous>, transform_indices = @transform_2, window_bounds = array<i64: 1, 128>}, {transform_indices = @transform_3, window_bounds = array<i64: 32, 128>}]} {
    %c0 = arith.constant 0 : index
    %c0_0 = arith.constant 0 : index
    %0 = vector.load %arg1[%c0, %c0_0] : memref<32x32xf32, #tpu.memory_space<vmem>>, vector<32x32xf32>
    %1 = arith.truncf %0 : vector<32x32xf32> to vector<32x32xbf16>
    %c0_1 = arith.constant 0 : index
    %c0_2 = arith.constant 0 : index
    %2 = vector.load %arg2[%c0_1, %c0_2] : memref<32x128xbf16, #tpu.memory_space<vmem>>, vector<32x128xbf16>
    %cst = arith.constant dense<0.000000e+00> : vector<32x128xf32>
    %3 = tpu.matmul %1, %2, %cst {dimension_numbers = #tpu.dot_dimension_numbers<[1], [0], [0], [1], [0, 0, 1, 1], [], []>} : vector<32x32xbf16>, vector<32x128xbf16>, vector<32x128xf32> -> vector<32x128xf32>
    %c0_3 = arith.constant 0 : index
    %c0_4 = arith.constant 0 : index
    %4 = vector.load %arg3[%c0_3, %c0_4] : memref<1x128xf32, #tpu.memory_space<vmem>>, vector<1x128xf32>
    %5 = vector.broadcast %4 : vector<1x128xf32> to vector<32x128xf32>
    %6 = arith.addf %3, %5 : vector<32x128xf32>
    %c0_5 = arith.constant 0 : index
    %c0_6 = arith.constant 0 : index
    %7 = vector.load %arg4[%c0_5, %c0_6] : memref<32x128xf32, #tpu.memory_space<vmem>>, vector<32x128xf32>
    tpu.vector_store %arg4[%c0_5, %c0_6], %6 {strides = array<i32>} : memref<32x128xf32, #tpu.memory_space<vmem>>, vector<32x128xf32>,
    return
  }
  func.func @transform_0(%arg0: i32) -> (i32, i32) {
    %c0_i32 = arith.constant 0 : i32
    %c0_i32_0 = arith.constant 0 : i32
    return %arg0, %c0_i32 : i32, i32
  }
  func.func @transform_1(%arg0: i32) -> (i32, i32) {
    %c0_i32 = arith.constant 0 : i32
    %c0_i32_0 = arith.constant 0 : i32
    %c0_i32_1 = arith.constant 0 : i32
    return %c0_i32, %c0_i32_0 : i32, i32
  }
  func.func @transform_2(%arg0: i32) -> (i32, i32) {
    %c0_i32 = arith.constant 0 : i32
    %c0_i32_0 = arith.constant 0 : i32
    %c0_i32_1 = arith.constant 0 : i32
    return %c0_i32, %c0_i32_0 : i32, i32
  }
  func.func @transform_3(%arg0: i32) -> (i32, i32) {
    %c0_i32 = arith.constant 0 : i32
    %c0_i32_0 = arith.constant 0 : i32
    return %arg0, %c0_i32 : i32, i32
  }
}

</mosaic_0001>

<bundles_post_ra>
// kernel: _vec2patch_forward.1
= control target key start
LH: loop header
LB: loop body
LE: loop exit
PB: predicated region body
PF: predicated region fallthrough
CT: control target
= control target key end

     0   :  { %8 = vsyncpa [#allocation3], 0  ;;  %s229_s0 = inlined_call_operand.hbm [shape: f32[32,32], index: 0, kind: input, shape index: {}]   ;;  %s230_s1 = inlined_call_operand.hbm [shape: bf16[32,128], index: 1, kind: input, shape index: {}]   ;;  %s231_s2 = inlined_call_operand.vmem [shape: f32[1,128], index: 2, kind: input, shape index: {}]   ;;  %s232_s3 = inlined_call_operand.vmem [shape: f32[32,64], index: 3, kind: output, shape index: {}]  }
   0x1   :  { %s14_s14 = sshll.u32 %s229_s0, 4  ;;  %s15_s14 = int_to_ptr.hbm [resolvable:$true] %s14_s14 }
   0x2   :  { %9 = vsyncpa [#allocation5], 0  ;;  %s182_s15 = smov [#allocation2]   ;;  %s27_s19 = sshll.u32 %s230_s1, 4  ;;  %s28_s19 = int_to_ptr.hbm [resolvable:$true] %s27_s19 }
   0x3   :  { %s16_s16 = sshll.u32 %s182_s15, 4  ;;  %s183_s20 = smov 128   ;;  %s17_s16 = int_to_ptr.vmem [resolvable:$true] %s16_s16 }
   0x4   :  { %s184_s21 = smov 8   ;;  %s185_s22 = smov [#allocation4]  }
   0x5   :  { %22 = dma.hbm_to_vmem [thread:$0]  %s15_s14, 512, %s17_s16, [#allocation3], %s183_s20, %s183_s20, %s184_s21  }
   0x6   :  { %s29_s23 = sshll.u32 %s185_s22, 4  ;;  %s186_s24 = smov 64   ;;  %s30_s23 = int_to_ptr.vmem [resolvable:$true] %s29_s23 }
   0x7   :  { %s187_s25 = smov 4  }
   0x8   :  { %35 = dma.hbm_to_vmem [thread:$0]  %s28_s19, 256, %s30_s23, [#allocation5], %s186_s24, %s186_s24, %s187_s25  }
   0x9   :  { %178 = dma.done.wait [#allocation3], 512  }
   0xa   :  { %179 = vsyncadd [#allocation3], 4294966784 }
   0xb   :  { %180 = dma.done.wait [#allocation5], 256  }
   0xc   :  { %181 = vsyncadd [#allocation5], 4294967040  ;;  %v120_v0 = vld [vmem:[#allocation4 + $0x8] sm:$0xff]  ;;  %v119_v1 = vld [vmem:[#allocation4] sm:$0xff]  ;;  %vm73_vm0 = vcmask 261120  }
   0xd   :  { %v47_v2 = vld [vmem:[#allocation2] sm:$0xff]  ;;  %v48_v3 = vld [vmem:[#allocation2 + $0x8] sm:$0xff]  ;;  %86 = vmatpush.bf16.msra.mxu0 %v120_v0  ;;  %121 = vmatpush.bf16.msra.mxu1 %v120_v0  ;;  %v49_v4 = vld [vmem:[#allocation2 + $0x10] sm:$0xff] }
   0xe   :  { %v50_v5 = vld [vmem:[#allocation2 + $0x18] sm:$0xff]  ;;  %v51_v6 = vpack.c.bf16 %v48_v3, %v47_v2  ;;  %v129_v8 = vld [vmem:[%s231_s2] ss:$0 sm:$0xff] }
   0xf   :  { %v52_v7 = vpack.c.bf16 %v50_v5, %v49_v4 }
  0x11   :  { %87 = vmatpush.bf16.msra.mxu0 %v119_v1  ;;  %122 = vmatpush.bf16.msra.mxu1 %v119_v1 }
  0x14   :  { %117 = vmatmul.msk.bf16.vlgmr.msra.gmra.mxu0 %vm73_vm0, %v51_v6  ;;  %118 = vmatmul.msk.bf16.vlgmr.msra.gmra.mxu1 %vm73_vm0, %v52_v7 }
  0x91   :  { %v89_v9 = vpop.f32.mrf.mxu0  ;;  %v94_v10 = vpop.f32.mrf.mxu1 }
  0x92   :  { %v90_v11 = vadd.f32 %v129_v8, %v89_v9  ;;  %v95_v12 = vadd.f32 %v129_v8, %v94_v10 }
  0x94   :  { %99 = vst [vmem:[%s232_s3] sm:$0xff] %v90_v11 }
  0x95   :  { %101 = vst [vmem:[%s232_s3 + $0x10] sm:$0xff] %v95_v12 }
  0x99   :  { %v91_v13 = vpop.f32.mrf.mxu0  ;;  %v96_v14 = vpop.f32.mrf.mxu1 }
  0x9a   :  { %v92_v15 = vadd.f32 %v129_v8, %v91_v13  ;;  %v97_v16 = vadd.f32 %v129_v8, %v96_v14 }
  0x9c   :  { %100 = vst [vmem:[%s232_s3 + $0x8] sm:$0xff] %v92_v15 }
  0x9d   :  { %102 = vst [vmem:[%s232_s3 + $0x18] sm:$0xff] %v97_v16 }
  0x9e   :  { %107 = vsyncpa [#allocation3], 1 }
  0x9f   :  { %108 = vsyncpa [#allocation5], 1 }

</bundles_post_ra>
